<compile_context>
chip_gen: v6e
topology: v6e:2x2x1
jax: 0.10.0
libtpu: 0.0.40
codegen_flags: <defaults>
</compile_context>

<pallas_src>
import jax
import jax.numpy as jnp
from jax.experimental import pallas as pl
from jax.experimental.pallas import tpu as pltpu

NEG_SLOPE = 0.01  # F.leaky_relu default


def _leaky(x):
    return jnp.where(x > 0, x, NEG_SLOPE * x)


def _round_up(v, m):
    return (v + m - 1) // m * m


def _film_kernel(gamma_ref, beta_ref, x_ref, o_ref):
    # Memory-bound elementwise FMA; gamma/beta are (row_tile, 1) f32 and
    # broadcast across the lane (HW) axis.  Compute in f32, store in x dtype.
    y = x_ref[...].astype(jnp.float32) * gamma_ref[...] + beta_ref[...]
    o_ref[...] = y.astype(o_ref.dtype)


def _choose_tiles(R, HW, itemsize, target_block_bytes=4 << 20, col_cap=8192):
    """Pick (row_tile, col_tile) for the (R, HW) view of x.

    Every returned tile dim is either a multiple of the hardware tiling
    (sublane, 128) or equal to the full array dim, so no host-side padding is
    ever needed; ragged edge blocks are handled by Pallas.
    """
    sub = max(8, 8 * (4 // itemsize))  # f32: 8, bf16: 16, int8/fp8: 32

    # Columns: take the full width when reasonable -> fully contiguous DMAs.
    col_tile = HW if HW <= col_cap else col_cap  # col_cap is a 128-multiple

    # Rows: fill ~target bytes per block.
    rows_budget = max(1, target_block_bytes // (col_tile * itemsize))
    row_tile = max(sub, (rows_budget // sub) * sub)
    if row_tile >= R:
        row_tile = R  # block dim == full array dim is always legal

    # Megacore (v7x has 2 TensorCores): expose >= 2 grid blocks when possible.
    if pl.cdiv(R, row_tile) * pl.cdiv(HW, col_tile) < 2:
        if R >= 2 * sub:
            row_tile = _round_up(pl.cdiv(R, 2), sub)
        elif HW >= 256:
            col_tile = _round_up(pl.cdiv(HW, 2), 128)
    return row_tile, col_tile


def film_forward(x_nchw, task_emb, w1, b1, w2, b2, channels,
                 mu_multiplier=1.0, sigma_multiplier=1.0):
    """x_nchw: (N, C, H, W) any float dtype. task_emb: (N, in_channels) f32.

    Weights pre-transposed to (in, out): w1 (IN, HID), w2 (HID, 2C);
    biases (1, HID) / (1, 2C).
    """
    N, C, H, W = x_nchw.shape
    assert C == channels
    if task_emb is None:
        # torch path: mu = sigma = 0  ->  y = x
        return x_nchw
    assert task_emb.shape[0] == N

    R, HW = N * C, H * W

    # ---- tiny MLP in plain XLA (O(N*HID*2C) flops: negligible) ----
    h = _leaky(task_emb @ w1 + b1)                        # (N, HID)
    o = h @ w2 + b2                                       # (N, 2C)
    mu = jnp.clip(_leaky(o[:, :C]) * mu_multiplier, -1.0, 1.0)
    sigma = _leaky(o[:, C:]) * sigma_multiplier
    gamma = (1.0 + mu).astype(jnp.float32).reshape(R, 1)  # per-(n,c) scale
    beta = sigma.astype(jnp.float32).reshape(R, 1)        # per-(n,c) shift

    # ---- flatten (N, C) onto sublanes, HW dense on lanes; keep x dtype ----
    # TODO(synk): for HW < 128 a fully lane-dense (N, C*HW) layout with an
    # in-kernel gamma broadcast would avoid masked lane stores; the current
    # layout stays correct (block dims fall back to the full array dims).
    x = x_nchw.reshape(R, HW)
    itemsize = jnp.dtype(x.dtype).itemsize
    row_tile, col_tile = _choose_tiles(R, HW, itemsize)
    grid = (pl.cdiv(R, row_tile), pl.cdiv(HW, col_tile))

    out = pl.pallas_call(
        _film_kernel,
        out_shape=jax.ShapeDtypeStruct((R, HW), x.dtype),
        grid_spec=pltpu.PrefetchScalarGridSpec(
            num_scalar_prefetch=0,
            grid=grid,
            in_specs=[
                pl.BlockSpec((row_tile, 1), lambda i, j: (i, 0)),         # gamma
                pl.BlockSpec((row_tile, 1), lambda i, j: (i, 0)),         # beta
                pl.BlockSpec((row_tile, col_tile), lambda i, j: (i, j)),  # x
            ],
            out_specs=pl.BlockSpec((row_tile, col_tile), lambda i, j: (i, j)),
        ),
        compiler_params=pltpu.CompilerParams(
            dimension_semantics=("parallel", "parallel"),
        ),
    )(gamma, beta, x)

    return out.reshape(N, C, H, W)


def film_reference(x_nchw, task_emb, w1, b1, w2, b2, channels,
                   mu_multiplier=1.0, sigma_multiplier=1.0):
    h = _leaky(task_emb @ w1 + b1)
    o = h @ w2 + b2
    mu = jnp.clip(_leaky(o[:, :channels]) * mu_multiplier, -1.0, 1.0)
    sigma = _leaky(o[:, channels:]) * sigma_multiplier
    return x_nchw * (1.0 + mu[:, :, None, None]) + sigma[:, :, None, None]


if __name__ == "__main__":
    # Module config: channels=4, in_channels=1, alpha=1
    N, C, H, W = 2, 4, 16, 16
    IN_CH = 1
    ALPHA = 1
    HID = int(ALPHA * C * 2)       # 8
    OUT = C * 2                    # 8

    key = jax.random.PRNGKey(0)
    k_x, k_e, k_w1, k_b1, k_w2, k_b2 = jax.random.split(key, 6)

    x = jax.random.normal(k_x, (N, C, H, W), dtype=jnp.float32)
    task_emb = jax.random.normal(k_e, (N, IN_CH), dtype=jnp.float32)

    # PyTorch Linear-style uniform init, stored pre-transposed as (in, out).
    bound1 = 1.0 / (IN_CH ** 0.5)
    w1 = jax.random.uniform(k_w1, (IN_CH, HID), jnp.float32, -bound1, bound1)
    b1 = jax.random.uniform(k_b1, (1, HID), jnp.float32, -bound1, bound1)
    bound2 = 1.0 / (HID ** 0.5)
    w2 = jax.random.uniform(k_w2, (HID, OUT), jnp.float32, -bound2, bound2)
    b2 = jax.random.uniform(k_b2, (1, OUT), jnp.float32, -bound2, bound2)

    y = film_forward(x, task_emb, w1, b1, w2, b2, channels=C)
    y = jax.block_until_ready(y)

    y_ref = film_reference(x, task_emb, w1, b1, w2, b2, channels=C)
    assert y.dtype == x.dtype, "output dtype must match input dtype"
    assert y.shape == x.shape
    assert jnp.allclose(y, y_ref, atol=1e-5, rtol=1e-5), "mismatch vs reference"

    print("KERNEL_OK")
</pallas_src>

<mosaic_0001>
module attributes {stable_mosaic.version = 11 : i64} {
  func.func @_film_kernel(%arg0: i32, %arg1: i32, %arg2: memref<8x1xf32, #tpu.memory_space<vmem>>, %arg3: memref<8x1xf32, #tpu.memory_space<vmem>>, %arg4: memref<8x128xf32, #tpu.memory_space<vmem>>, %arg5: memref<8x128xf32, #tpu.memory_space<vmem>>) attributes {dimension_semantics = [#tpu.dimension_semantics<parallel>, #tpu.dimension_semantics<parallel>], iteration_bounds = array<i64: 1, 2>, scalar_prefetch = 0 : i64, scratch_operands = 0 : i64, tpu.core_type = #tpu.core_type<tc>, window_params = [{transform_indices = @transform_0, window_bounds = array<i64: 8, 1>}, {transform_indices = @transform_1, window_bounds = array<i64: 8, 1>}, {transform_indices = @transform_2, window_bounds = array<i64: 8, 128>}, {transform_indices = @transform_3, window_bounds = array<i64: 8, 128>}]} {
    %c0 = arith.constant 0 : index
    %c0_0 = arith.constant 0 : index
    %0 = vector.load %arg4[%c0, %c0_0] : memref<8x128xf32, #tpu.memory_space<vmem>>, vector<8x128xf32>
    %c0_1 = arith.constant 0 : index
    %c0_2 = arith.constant 0 : index
    %1 = vector.load %arg2[%c0_1, %c0_2] : memref<8x1xf32, #tpu.memory_space<vmem>>, vector<8x1xf32>
    %2 = vector.broadcast %1 : vector<8x1xf32> to vector<8x128xf32>
    %3 = arith.mulf %0, %2 : vector<8x128xf32>
    %c0_3 = arith.constant 0 : index
    %c0_4 = arith.constant 0 : index
    %4 = vector.load %arg3[%c0_3, %c0_4] : memref<8x1xf32, #tpu.memory_space<vmem>>, vector<8x1xf32>
    %5 = vector.broadcast %4 : vector<8x1xf32> to vector<8x128xf32>
    %6 = arith.addf %3, %5 : vector<8x128xf32>
    %c0_5 = arith.constant 0 : index
    %c0_6 = arith.constant 0 : index
    %7 = vector.load %arg5[%c0_5, %c0_6] : memref<8x128xf32, #tpu.memory_space<vmem>>, vector<8x128xf32>
    tpu.vector_store %arg5[%c0_5, %c0_6], %6 {strides = array<i32>} : memref<8x128xf32, #tpu.memory_space<vmem>>, vector<8x128xf32>,
    return
  }
  func.func @transform_0(%arg0: i32, %arg1: i32) -> (i32, i32) {
    %c0_i32 = arith.constant 0 : i32
    %c0_i32_0 = arith.constant 0 : i32
    return %arg0, %c0_i32 : i32, i32
  }
  func.func @transform_1(%arg0: i32, %arg1: i32) -> (i32, i32) {
    %c0_i32 = arith.constant 0 : i32
    %c0_i32_0 = arith.constant 0 : i32
    return %arg0, %c0_i32 : i32, i32
  }
  func.func @transform_2(%arg0: i32, %arg1: i32) -> (i32, i32) {
    %c0_i32 = arith.constant 0 : i32
    return %arg0, %arg1 : i32, i32
  }
  func.func @transform_3(%arg0: i32, %arg1: i32) -> (i32, i32) {
    %c0_i32 = arith.constant 0 : i32
    return %arg0, %arg1 : i32, i32
  }
}

</mosaic_0001>

<bundles_post_ra>
// kernel: tpu_custom_call.1
= control target key start
LH: loop header
LB: loop body
LE: loop exit
PB: predicated region body
PF: predicated region fallthrough
CT: control target
= control target key end

     0   :  { %8 = vsyncpa [#allocation3], 0  ;;  %s640_s0 = inlined_call_operand.vmem [shape: f32[8,1], index: 0, kind: input, shape index: {}]   ;;  %s641_s1 = inlined_call_operand.vmem [shape: f32[8,1], index: 1, kind: input, shape index: {}]   ;;  %s642_s2 = inlined_call_operand.vmem [shape: f32[8,256], index: 2, kind: input, shape index: {}]   ;;  %s643_s3 = inlined_call_operand.hbm [shape: f32[8,256], index: 3, kind: output, shape index: {}]  }
   0x1   :  { %10 = vsyncpa [#allocation3 + $0x1], 0  ;;  %s535_s12 = smov 0   ;;  %s537_s13 = smov 0  }
   0x2   :  { %s539_s14 = smov 0   ;;  %s541_s15 = smov 0  }
   0x3   :  { %s543_s16 = smov 0   ;;  %s545_s17 = smov 0  }
   0x4 LB: > { %s365_s18 = sadd.s32 4294967295, %s511_s17   ;;  %s366_s19 = sadd.s32 4294967294, %s511_s17   ;;  %s511_s17 = sphi %s545_s17, %s16_s17   ;;  %s507_s16 = sphi %s543_s16, %s650_s16   ;;  %s503_s15 = sphi %s541_s15, %s649_s15   ;;  %s499_s14 = sphi %s539_s14, %s648_s14   ;;  %s495_s13 = sphi %s537_s13, %s647_s13   ;;  %s491_s12 = sphi %s535_s12, %s646_s12  }
   0x5   : > { %s25_s20 = sadd.s32 1, %s507_s16  ;;  %s117_s21 = sadd.s32 1, %s499_s14 }
   0x6   : > { %p26_p0 = scmp.ge.s32.totalorder %s25_s20, 2  ;;  %p127_p1 = scmp.ne.s32.totalorder %s499_s14, %s495_s13 }
   0x7   : > { %p128_p2 = scmp.eq.s32.totalorder %s365_s18, 1  ;;  %p133_p3 = scmp.ne.s32.totalorder %s495_s13, %s491_s12 }
   0x8   : > { %s652_s20 = smov (%p26_p0, %s25_s20), 0  ;;  %p134_p5 = scmp.eq.s32.totalorder %s366_s19, 1 }
   0x9   : > { %p575_p4 = por %p128_p2, %p127_p1  ;;  %s113_s23 = ssub.s32 %s507_s16, %s652_s20 }
   0xa   : > { %p371_p6 = scmp.ge.s32.totalorder %s511_s17, 1  ;;  %p115_p7 = scmp.eq.s32.totalorder %s113_s23, 0 }
   0xb   : > { %p582_p8 = por %p134_p5, %p133_p3  ;;  %p177_p9 = scmp.lt.s32.totalorder %s511_s17, 3 }
   0xc   : > { %s588_s25 = scalar_select %p115_p7, %s499_s14, %s117_s21  }
   0xd   : > { %p178_p10 = pnand %p371_p6, %p177_p9 }
   0xe   : > { %p222_p11 = scmp.lt.s32.totalorder (!%p178_p10), %s503_s15, 1  ;;  %s209_s4 = sand.u32 (!%p178_p10), 1, %s495_s13  }
   0xf   : > { %181 = sbr.rel (%p178_p10) target bundleno = 165 (0xa5), region = 32  ;;  %s372_s6 = sshll.u32 (!%p178_p10), %s209_s4, 3 }
  0x10   : > { %s375_s10 = sshll.u32 (!%p178_p10), %s503_s15, 7  ;;  %s211_s11 = scalar_lea.vmem (!%p178_p10), [#allocation2], %s372_s6 }
  0x11   : > { %s260_s18 = sshll.u32 (!%p178_p10), %s211_s11, 4  ;;  %s258_s23 = scalar_lea.hbm (!%p178_p10), %s643_s3, %s375_s10  ;;  %s261_s18 = int_to_ptr.vmem [resolvable:$true] %s260_s18 }
  0x12   : > { %s245_s26 = scalar_lea.sflag (!%p178_p10), [#allocation3], %s209_s4  ;;  %s435_s27 = scalar_lea.vmem (!%p178_p10), %s261_s18, 128 }
  0x13   : > { %p436_p12 = scmp.ne.s32.totalorder (!%p178_p10), %s261_s18, %s435_s27  ;;  %s514_s28 = smov (!%p178_p10), [#allocation2]  }
  0x14   : > { %v229_v0 = vld [vmem:[%s640_s0] sm:$0xff]  ;;  %v513_v1 = vmov 0   ;;  %s223_s30 = scalar_select %p222_p11, %s503_s15, 1 }
  0x15   : > { %434 = vset.pattern.permute.xlu0 %v513_v1  ;;  %v236_v2 = vld [vmem:[%s641_s1] sm:$0xff]  ;;  %p437_p13 = pnand %p436_p12, %p575_p4  ;;  %s439_s29 = sshll.u32 %s514_s28, 4  ;;  %s440_s29 = int_to_ptr.vmem [resolvable:$false] %s439_s29 }
  0x16   : > { %232 = vperm.xlu0 %434, %v229_v0   ;;  %s373_s5 = sshll.u32 %s223_s30, 3  ;;  %s441_s15 = scalar_lea.vmem %s440_s29, 256 }
  0x17   : > { %s227_s9 = scalar_lea.vmem %s642_s2, %s373_s5  ;;  %p438_p0 = pneg %p437_p13 }
  0x18   : > { %v228_v4 = vld [vmem:[%s227_s9] sm:$0xff]  ;;  %p442_p1 = scmp.lt.s32.totalorder %s261_s18, %s440_s29  ;;  %p443_p2 = scmp.lt.s32.totalorder %s441_s15, %s435_s27 }
  0x1a   : > { %239 = vperm.xlu0 %434, %v236_v2   ;;  %p444_p3 = por %p443_p2, %p442_p1 }
  0x1c   : > { %p445_p5 = pnand %p444_p3, %p438_p0 }
  0x91   : > { %v233_v3 = vpop.permute.xlu0 %232 }
  0x92   : > { %v235_v5 = vmul.f32 %v233_v3, %v228_v4 }
  0x95   : > { %v240_v6 = vpop.permute.xlu0 %239 }
  0x96   : > { %v242_v7 = vadd.f32 %v240_v6, %v235_v5 }
  0x98   : > { %243 = vst [vmem:[%s211_s11] sm:$0xff] %v242_v7 }
  0x99   : > { %448 = shalt.err (!%p445_p5)
}
  0x9a   : > { %s449_s30 = scalar_lea.hbm %s258_s23, 128  ;;  %s453_s6 = scalar_lea.hbm %s643_s3, 256 }
  0x9b   : > { %p450_p6 = scmp.ne.s32.totalorder %s258_s23, %s449_s30  ;;  %p454_p10 = scmp.lt.s32.totalorder %s258_s23, %s643_s3 }
  0x9c   : > { %p455_p11 = scmp.lt.s32.totalorder %s453_s6, %s449_s30 }
  0x9d   : > { %p451_p7 = pnand %p450_p6, %p575_p4 }
  0x9e   : > { %p456_p12 = por %p455_p11, %p454_p10 }
  0x9f   : > { %p452_p9 = pneg %p451_p7 }
  0xa1   : > { %p457_p13 = pnand %p456_p12, %p452_p9 }
  0xa3   : > { %460 = shalt.err (!%p457_p13)
}
  0xa4   : > { %378 = dma.vmem_to_hbm [thread:$0]  (%p575_p4), %s261_s18, 128, %s258_s23, %s245_s26  }
  0xa5 PF: > { %p384_p0 = scmp.ge.s32.totalorder %s511_s17, 2  ;;  %s272_s9 = sand.u32 1, %s491_s12  }
  0xa6   : > { %s273_s10 = scalar_lea.sflag [#allocation3], %s272_s9 }
  0xa7   : > { %p381_p1 = pnand %p384_p0, %p582_p8 }
  0xa9   : > { %p382_p2 = pneg %p381_p1 }
  0xab   : > { %486 = dma.done.wait (%p382_p2), %s273_s10, 128  }
  0xac   : > { %488 = vsyncadd (%p382_p2), %s273_s10, 4294967168  ;;  %s16_s17 = sadd.s32 1, %s511_s17   ;;  %s646_s12 = smov %s495_s13 }
  0xad   : > { %p13_p3 = scmp.ge.s32.totalorder %s16_s17, 4   ;;  %s647_s13 = smov %s499_s14 }
  0xae   : > { %s648_s14 = smov %s588_s25  ;;  %s649_s15 = smov %s507_s16 }
  0xaf   : > { %s650_s16 = smov %s652_s20  ;;  %15 = sbr.rel (!%p13_p3) target bundleno = 4 (0x4), region = 73 }
  0xb4   :  { %278 = vsyncpa [#allocation3], 1 }
  0xb5   :  { %280 = vsyncpa [#allocation3 + $0x1], 1 }

</bundles_post_ra>
